<compile_context>
chip_gen: v5e
topology: v5e:2x2
jax: 0.10.0
libtpu: 0.0.40
codegen_flags: <defaults>
</compile_context>

<pallas_src>
import functools

import jax
import jax.numpy as jnp
from jax.experimental import pallas as pl
from jax.experimental.pallas import tpu as pltpu

LANE = 128
VMEM = pltpu.MemorySpace.VMEM


def _round_up(v, m):
    return ((v + m - 1) // m) * m


def _pad2(a, rows, cols):
    r, c = a.shape
    return jnp.pad(a, ((0, rows - r), (0, cols - c)))


# ----------------------------------------------------------------------------
# Fused kernel: per batch tile of TB graphs
#   emb   = mean_nodes(tanh(A @ X @ Wg))          (bf16 MXU, f32 accumulate)
#   h     = relu(emb @ W1 + b1)
#   logit = h @ W2 + b2           (padded classes get bias -1e9)
#   logp  = log_softmax(logit)                    (f32, lane-dense)
#   out[:, :C]   = logp,  out[:, Cp-1] = per-graph NLL
# ----------------------------------------------------------------------------
def _fused_kernel(adj_ref, x_ref, wg_ref, w1_ref, b1_ref, w2_ref, b2_ref,
                  y_ref, out_ref, *, tb, n, f, lp, cp):
    a = adj_ref[...]                                   # (tb, n, n)  bf16
    x = x_ref[...]                                     # (tb, n, f)  bf16

    # GNN stage; contraction order chosen at trace time (free FLOP reduction).
    if f <= lp:
        # (A @ X) @ Wg : cheaper when node-feature dim < latent dim.
        ax = jnp.einsum('bnm,bmf->bnf', a, x,
                        preferred_element_type=jnp.float32)
        ax = ax.reshape(tb * n, f).astype(jnp.bfloat16)
        h = jnp.dot(ax, wg_ref[...], preferred_element_type=jnp.float32)
        h = h.reshape(tb, n, lp)
    else:
        # A @ (X @ Wg) : single big flat MXU matmul for the Wg contraction.
        xw = jnp.dot(x.reshape(tb * n, f), wg_ref[...],
                     preferred_element_type=jnp.float32)
        xw = xw.reshape(tb, n, lp).astype(jnp.bfloat16)
        h = jnp.einsum('bnm,bml->bnl', a, xw,
                       preferred_element_type=jnp.float32)

    h = jnp.tanh(h)                                    # f32, EUP
    emb = jnp.mean(h, axis=1)                          # (tb, lp)  f32

    # MLP head (fused; embedding stays in VMEM).
    hh = jnp.dot(emb.astype(jnp.bfloat16), w1_ref[...],
                 preferred_element_type=jnp.float32) + b1_ref[...]
    hh = jnp.maximum(hh, 0.0)
    logits = jnp.dot(hh.astype(jnp.bfloat16), w2_ref[...],
                     preferred_element_type=jnp.float32) + b2_ref[...]

    # Numerically stable log_softmax over the (lane-padded) class axis.
    m = jnp.max(logits, axis=-1, keepdims=True)
    lse = jnp.log(jnp.sum(jnp.exp(logits - m), axis=-1, keepdims=True)) + m
    logp = logits - lse                                # (tb, cp)

    # Per-graph NLL, stashed in the last (padding) lane of the output slab.
    lane = jax.lax.broadcasted_iota(jnp.int32, (tb, cp), 1)
    onehot = (lane == y_ref[...]).astype(jnp.float32)  # y_ref: (tb, 1) int32
    nll = -jnp.sum(onehot * logp, axis=-1, keepdims=True)   # (tb, 1)

    out_ref[...] = jnp.where(lane == cp - 1, nll, logp)


# ----------------------------------------------------------------------------
# Wrapper: pad / cast params, launch one fused pallas_call, slice outputs.
# ----------------------------------------------------------------------------
@jax.jit
def classifier_forward(adj, x, y, params):
    B, N, _ = adj.shape
    F = x.shape[-1]
    L = params["wg"].shape[-1]
    H = params["w1"].shape[-1]
    C = params["w2"].shape[-1]

    # Lane-pad all small feature dims to the 128-lane vreg width; reserve the
    # last class lane for the per-graph NLL.
    Lp = _round_up(L, LANE)
    Hp = _round_up(H, LANE)
    Cp = _round_up(C + 1, LANE)

    # Graphs per grid step.  TB=8 keeps sublane alignment and keeps the
    # double-buffered (TB,N,N)+(TB,N,F) bf16 blocks far under the 32 MiB
    # scoped-VMEM default (matters on v7x: 64 MiB physical).
    TB = 8 if (B % 8 == 0) else B
    n_tiles = B // TB

    # bf16 matmul operands (halves DMA bytes, MXU-native); biases stay f32.
    wg = _pad2(params["wg"], F, Lp).astype(jnp.bfloat16)
    w1 = _pad2(params["w1"], Lp, Hp).astype(jnp.bfloat16)
    b1 = _pad2(params["b1"].astype(jnp.float32), 1, Hp)
    w2 = _pad2(params["w2"], Hp, Cp).astype(jnp.bfloat16)
    b2 = jnp.pad(params["b2"].astype(jnp.float32),
                 ((0, 0), (0, Cp - C)), constant_values=-1e9)
    adj_bf = adj.astype(jnp.bfloat16)
    x_bf = x.astype(jnp.bfloat16)

    # Advisory cost estimate for the XLA scheduler.
    gnn_flops = (2 * N * N * F + 2 * N * F * Lp) if F <= Lp \
        else (2 * N * F * Lp + 2 * N * N * Lp)
    flops = B * (gnn_flops + 2 * Lp * Hp + 2 * Hp * Cp)
    transcendentals = B * (N * Lp + Cp)
    bytes_accessed = (B * N * N * 2 + B * N * F * 2 + B * 4 + B * Cp * 4
                      + (F * Lp + Lp * Hp + Hp * Cp) * 2 + (Hp + Cp) * 4)

    kernel = functools.partial(_fused_kernel, tb=TB, n=N, f=F, lp=Lp, cp=Cp)

    slab = pl.pallas_call(
        kernel,
        out_shape=jax.ShapeDtypeStruct((B, Cp), jnp.float32),
        grid_spec=pltpu.PrefetchScalarGridSpec(
            num_scalar_prefetch=0,
            grid=(n_tiles,),
            in_specs=[
                pl.BlockSpec((TB, N, N), lambda b: (b, 0, 0), memory_space=VMEM),
                pl.BlockSpec((TB, N, F), lambda b: (b, 0, 0), memory_space=VMEM),
                pl.BlockSpec((F, Lp), lambda b: (0, 0), memory_space=VMEM),
                pl.BlockSpec((Lp, Hp), lambda b: (0, 0), memory_space=VMEM),
                pl.BlockSpec((1, Hp), lambda b: (0, 0), memory_space=VMEM),
                pl.BlockSpec((Hp, Cp), lambda b: (0, 0), memory_space=VMEM),
                pl.BlockSpec((1, Cp), lambda b: (0, 0), memory_space=VMEM),
                pl.BlockSpec((TB, 1), lambda b: (b, 0), memory_space=VMEM),
            ],
            out_specs=pl.BlockSpec((TB, Cp), lambda b: (b, 0),
                                   memory_space=VMEM),
        ),
        compiler_params=pltpu.CompilerParams(
            # Per-tile output + independent per-graph math -> safe to shard
            # grid steps across both TensorCores on v7x.
            dimension_semantics=("parallel",),
            # Explicit scoped-VMEM limit (v5e default is only 16 MiB).
            vmem_limit_bytes=48 * 1024 * 1024,
        ),
        cost_estimate=pl.CostEstimate(
            flops=int(flops),
            transcendentals=int(transcendentals),
            bytes_accessed=int(bytes_accessed),
        ),
    )(adj_bf, x_bf, wg, w1, b1, w2, b2, y)

    logp = slab[:, :C]
    # Final mean over B per-graph NLL scalars (trivial; kept outside so the
    # batch grid axis stays race-free under "parallel").
    loss = jnp.mean(slab[:, Cp - 1])
    return logp, loss


def init_params(key, feat_dim, latent_dim, hidden, num_class):
    k1, k2, k3 = jax.random.split(key, 3)
    return {
        "wg": 0.1 * jax.random.normal(k1, (feat_dim, latent_dim), jnp.float32),
        "w1": 0.1 * jax.random.normal(k2, (latent_dim, hidden), jnp.float32),
        "b1": jnp.zeros((1, hidden), jnp.float32),
        "w2": 0.1 * jax.random.normal(k3, (hidden, num_class), jnp.float32),
        "b2": jnp.zeros((1, num_class), jnp.float32),
    }


def reference_forward(adj, x, y, params):
    """Pure-JAX f32 reference for correctness checking."""
    h = jnp.tanh(jnp.einsum('bnm,bmf,fl->bnl', adj, x, params["wg"]))
    emb = jnp.mean(h, axis=1)
    hh = jax.nn.relu(emb @ params["w1"] + params["b1"])
    logits = hh @ params["w2"] + params["b2"]
    logp = jax.nn.log_softmax(logits, axis=-1)
    loss = -jnp.mean(jnp.take_along_axis(logp, y, axis=1))
    return logp, loss


if __name__ == "__main__":
    # Small deterministic example shapes implied by the module:
    #   B graphs, N nodes/graph, feat_dim node features,
    #   latent_dim == out_dim, hidden MLP width, num_class classes.
    B, N, FEAT = 16, 16, 8
    LATENT, HIDDEN, NUM_CLASS = 32, 32, 4

    key = jax.random.PRNGKey(0)
    k_x, k_a, k_y, k_p = jax.random.split(key, 4)

    # Node features.
    x = jax.random.normal(k_x, (B, N, FEAT), jnp.float32)

    # Random undirected adjacency with self-loops, row-normalized.
    raw = (jax.random.uniform(k_a, (B, N, N)) < 0.3).astype(jnp.float32)
    adj = jnp.maximum(raw, jnp.transpose(raw, (0, 2, 1)))
    adj = adj + jnp.eye(N, dtype=jnp.float32)[None]
    adj = adj / jnp.sum(adj, axis=-1, keepdims=True)

    # Integer class labels, shape [B, 1] int32.
    y = jax.random.randint(k_y, (B, 1), 0, NUM_CLASS, dtype=jnp.int32)

    params = init_params(k_p, FEAT, LATENT, HIDDEN, NUM_CLASS)

    logp, loss = classifier_forward(adj, x, y, params)
    jax.block_until_ready((logp, loss))

    ref_logp, ref_loss = reference_forward(adj, x, y, params)

    assert logp.shape == (B, NUM_CLASS)
    assert bool(jnp.isfinite(loss))
    # log_softmax rows must sum to ~1 in prob space (f32 softmax in kernel).
    assert bool(jnp.allclose(jnp.sum(jnp.exp(logp), axis=-1), 1.0, atol=1e-4))
    # bf16 matmul operands -> loose tolerance vs f32 reference.
    assert bool(jnp.allclose(logp, ref_logp, atol=0.1, rtol=0.05))
    assert bool(jnp.allclose(loss, ref_loss, atol=0.1, rtol=0.05))

    print("KERNEL_OK")
</pallas_src>

<mosaic_0001>
module attributes {stable_mosaic.version = 11 : i64} {
  func.func @_fused_kernel(%arg0: i32, %arg1: memref<8x16x16xbf16, #tpu.memory_space<vmem>>, %arg2: memref<8x16x8xbf16, #tpu.memory_space<vmem>>, %arg3: memref<8x128xbf16, #tpu.memory_space<vmem>>, %arg4: memref<128x128xbf16, #tpu.memory_space<vmem>>, %arg5: memref<1x128xf32, #tpu.memory_space<vmem>>, %arg6: memref<128x128xbf16, #tpu.memory_space<vmem>>, %arg7: memref<1x128xf32, #tpu.memory_space<vmem>>, %arg8: memref<8x1xi32, #tpu.memory_space<vmem>>, %arg9: memref<8x128xf32, #tpu.memory_space<vmem>>) attributes {dimension_semantics = [#tpu.dimension_semantics<parallel>], iteration_bounds = array<i64: 2>, scalar_prefetch = 0 : i64, scratch_operands = 0 : i64, tpu.core_type = #tpu.core_type<tc>, window_params = [{transform_indices = @transform_0, window_bounds = array<i64: 8, 16, 16>}, {transform_indices = @transform_1, window_bounds = array<i64: 8, 16, 8>}, {pipeline_mode = #tpu.pipeline_mode<synchronous>, transform_indices = @transform_2, window_bounds = array<i64: 8, 128>}, {pipeline_mode = #tpu.pipeline_mode<synchronous>, transform_indices = @transform_3, window_bounds = array<i64: 128, 128>}, {pipeline_mode = #tpu.pipeline_mode<synchronous>, transform_indices = @transform_4, window_bounds = array<i64: 1, 128>}, {pipeline_mode = #tpu.pipeline_mode<synchronous>, transform_indices = @transform_5, window_bounds = array<i64: 128, 128>}, {pipeline_mode = #tpu.pipeline_mode<synchronous>, transform_indices = @transform_6, window_bounds = array<i64: 1, 128>}, {transform_indices = @transform_7, window_bounds = array<i64: 8, 1>}, {transform_indices = @transform_8, window_bounds = array<i64: 8, 128>}]} {
    %c0 = arith.constant 0 : index
    %c0_0 = arith.constant 0 : index
    %c0_1 = arith.constant 0 : index
    %0 = vector.load %arg1[%c0, %c0_0, %c0_1] : memref<8x16x16xbf16, #tpu.memory_space<vmem>>, vector<8x16x16xbf16>
    %c0_2 = arith.constant 0 : index
    %c0_3 = arith.constant 0 : index
    %c0_4 = arith.constant 0 : index
    %1 = vector.load %arg2[%c0_2, %c0_3, %c0_4] : memref<8x16x8xbf16, #tpu.memory_space<vmem>>, vector<8x16x8xbf16>
    "tpu.trace_start"() <{level = 10 : i32, message = "bnm,bmf->bnf"}> : () -> ()
    %cst = arith.constant dense<0.000000e+00> : vector<8x16x8xf32>
    %2 = tpu.matmul %0, %1, %cst {dimension_numbers = #tpu.dot_dimension_numbers<[2], [1], [1], [2], [0, 0, 0, 1, 1, 2], [0], [0]>} : vector<8x16x16xbf16>, vector<8x16x8xbf16>, vector<8x16x8xf32> -> vector<8x16x8xf32>
    "tpu.trace_stop"() : () -> ()
    %3 = vector.shape_cast %2 : vector<8x16x8xf32> to vector<128x8xf32>
    %4 = arith.truncf %3 : vector<128x8xf32> to vector<128x8xbf16>
    %c0_5 = arith.constant 0 : index
    %c0_6 = arith.constant 0 : index
    %5 = vector.load %arg3[%c0_5, %c0_6] : memref<8x128xbf16, #tpu.memory_space<vmem>>, vector<8x128xbf16>
    %cst_7 = arith.constant dense<0.000000e+00> : vector<128x128xf32>
    %6 = tpu.matmul %4, %5, %cst_7 {dimension_numbers = #tpu.dot_dimension_numbers<[1], [0], [0], [1], [0, 0, 1, 1], [], []>} : vector<128x8xbf16>, vector<8x128xbf16>, vector<128x128xf32> -> vector<128x128xf32>
    %7 = vector.shape_cast %6 : vector<128x128xf32> to vector<8x16x128xf32>
    %8 = math.tanh %7 : vector<8x16x128xf32>
    %cst_8 = arith.constant dense<0.000000e+00> : vector<8x128xf32>
    %9 = vector.multi_reduction <add>, %8, %cst_8 [1] : vector<8x16x128xf32> to vector<8x128xf32>
    %cst_9 = arith.constant 1.600000e+01 : f32
    %10 = vector.broadcast %cst_9 : f32 to vector<8x128xf32>
    %11 = arith.divf %9, %10 : vector<8x128xf32>
    %12 = arith.truncf %11 : vector<8x128xf32> to vector<8x128xbf16>
    %c0_10 = arith.constant 0 : index
    %c0_11 = arith.constant 0 : index
    %13 = vector.load %arg4[%c0_10, %c0_11] : memref<128x128xbf16, #tpu.memory_space<vmem>>, vector<128x128xbf16>
    %cst_12 = arith.constant dense<0.000000e+00> : vector<8x128xf32>
    %14 = tpu.matmul %12, %13, %cst_12 {dimension_numbers = #tpu.dot_dimension_numbers<[1], [0], [0], [1], [0, 0, 1, 1], [], []>} : vector<8x128xbf16>, vector<128x128xbf16>, vector<8x128xf32> -> vector<8x128xf32>
    %c0_13 = arith.constant 0 : index
    %c0_14 = arith.constant 0 : index
    %15 = vector.load %arg5[%c0_13, %c0_14] : memref<1x128xf32, #tpu.memory_space<vmem>>, vector<1x128xf32>
    %16 = vector.broadcast %15 : vector<1x128xf32> to vector<8x128xf32>
    %17 = arith.addf %14, %16 : vector<8x128xf32>
    %cst_15 = arith.constant 0.000000e+00 : f32
    %18 = vector.broadcast %cst_15 : f32 to vector<8x128xf32>
    %19 = arith.maximumf %17, %18 : vector<8x128xf32>
    %20 = arith.truncf %19 : vector<8x128xf32> to vector<8x128xbf16>
    %c0_16 = arith.constant 0 : index
    %c0_17 = arith.constant 0 : index
    %21 = vector.load %arg6[%c0_16, %c0_17] : memref<128x128xbf16, #tpu.memory_space<vmem>>, vector<128x128xbf16>
    %cst_18 = arith.constant dense<0.000000e+00> : vector<8x128xf32>
    %22 = tpu.matmul %20, %21, %cst_18 {dimension_numbers = #tpu.dot_dimension_numbers<[1], [0], [0], [1], [0, 0, 1, 1], [], []>} : vector<8x128xbf16>, vector<128x128xbf16>, vector<8x128xf32> -> vector<8x128xf32>
    %c0_19 = arith.constant 0 : index
    %c0_20 = arith.constant 0 : index
    %23 = vector.load %arg7[%c0_19, %c0_20] : memref<1x128xf32, #tpu.memory_space<vmem>>, vector<1x128xf32>
    %24 = vector.broadcast %23 : vector<1x128xf32> to vector<8x128xf32>
    %25 = arith.addf %22, %24 : vector<8x128xf32>
    %cst_21 = arith.constant dense<0xFF800000> : vector<8xf32>
    %26 = vector.multi_reduction <maximumf>, %25, %cst_21 [1] : vector<8x128xf32> to vector<8xf32>
    %27 = vector.shape_cast %26 : vector<8xf32> to vector<8x1xf32>
    %28 = vector.broadcast %27 : vector<8x1xf32> to vector<8x128xf32>
    %29 = arith.subf %25, %28 : vector<8x128xf32>
    %30 = math.exp %29 : vector<8x128xf32>
    %cst_22 = arith.constant dense<0.000000e+00> : vector<8xf32>
    %31 = vector.multi_reduction <add>, %30, %cst_22 [1] : vector<8x128xf32> to vector<8xf32>
    %32 = vector.shape_cast %31 : vector<8xf32> to vector<8x1xf32>
    %33 = math.log %32 : vector<8x1xf32>
    %34 = arith.addf %33, %27 : vector<8x1xf32>
    %35 = vector.broadcast %34 : vector<8x1xf32> to vector<8x128xf32>
    %36 = arith.subf %25, %35 : vector<8x128xf32>
    %37 = tpu.iota {dimensions = array<i32: 1>} : vector<8x128xi32>
    %c0_23 = arith.constant 0 : index
    %c0_24 = arith.constant 0 : index
    %38 = vector.load %arg8[%c0_23, %c0_24] : memref<8x1xi32, #tpu.memory_space<vmem>>, vector<8x1xi32>
    %39 = vector.broadcast %38 : vector<8x1xi32> to vector<8x128xi32>
    %40 = arith.cmpi eq, %37, %39 : vector<8x128xi32>
    %41 = arith.extui %40 : vector<8x128xi1> to vector<8x128xi32>
    %42 = arith.sitofp %41 : vector<8x128xi32> to vector<8x128xf32>
    %43 = arith.mulf %42, %36 : vector<8x128xf32>
    %cst_25 = arith.constant dense<0.000000e+00> : vector<8xf32>
    %44 = vector.multi_reduction <add>, %43, %cst_25 [1] : vector<8x128xf32> to vector<8xf32>
    %45 = vector.shape_cast %44 : vector<8xf32> to vector<8x1xf32>
    %cst_26 = arith.constant 0.000000e+00 : f32
    %46 = vector.broadcast %cst_26 : f32 to vector<8x1xf32>
    %47 = arith.subf %46, %45 : vector<8x1xf32>
    %c127_i32 = arith.constant 127 : i32
    %48 = vector.broadcast %c127_i32 : i32 to vector<8x128xi32>
    %49 = arith.cmpi eq, %37, %48 : vector<8x128xi32>
    %50 = vector.shape_cast %47 : vector<8x1xf32> to vector<8x1xf32>
    %51 = vector.broadcast %50 : vector<8x1xf32> to vector<8x128xf32>
    %52 = arith.select %49, %51, %36 : vector<8x128xi1>, vector<8x128xf32>
    %c0_27 = arith.constant 0 : index
    %c0_28 = arith.constant 0 : index
    %53 = vector.load %arg9[%c0_27, %c0_28] : memref<8x128xf32, #tpu.memory_space<vmem>>, vector<8x128xf32>
    tpu.vector_store %arg9[%c0_27, %c0_28], %52 {strides = array<i32>} : memref<8x128xf32, #tpu.memory_space<vmem>>, vector<8x128xf32>,
    return
  }
  func.func @transform_0(%arg0: i32) -> (i32, i32, i32) {
    %c0_i32 = arith.constant 0 : i32
    %c0_i32_0 = arith.constant 0 : i32
    %c0_i32_1 = arith.constant 0 : i32
    return %arg0, %c0_i32, %c0_i32_0 : i32, i32, i32
  }
  func.func @transform_1(%arg0: i32) -> (i32, i32, i32) {
    %c0_i32 = arith.constant 0 : i32
    %c0_i32_0 = arith.constant 0 : i32
    %c0_i32_1 = arith.constant 0 : i32
    return %arg0, %c0_i32, %c0_i32_0 : i32, i32, i32
  }
  func.func @transform_2(%arg0: i32) -> (i32, i32) {
    %c0_i32 = arith.constant 0 : i32
    %c0_i32_0 = arith.constant 0 : i32
    %c0_i32_1 = arith.constant 0 : i32
    return %c0_i32, %c0_i32_0 : i32, i32
  }
  func.func @transform_3(%arg0: i32) -> (i32, i32) {
    %c0_i32 = arith.constant 0 : i32
    %c0_i32_0 = arith.constant 0 : i32
    %c0_i32_1 = arith.constant 0 : i32
    return %c0_i32, %c0_i32_0 : i32, i32
  }
  func.func @transform_4(%arg0: i32) -> (i32, i32) {
    %c0_i32 = arith.constant 0 : i32
    %c0_i32_0 = arith.constant 0 : i32
    %c0_i32_1 = arith.constant 0 : i32
    return %c0_i32, %c0_i32_0 : i32, i32
  }
  func.func @transform_5(%arg0: i32) -> (i32, i32) {
    %c0_i32 = arith.constant 0 : i32
    %c0_i32_0 = arith.constant 0 : i32
    %c0_i32_1 = arith.constant 0 : i32
    return %c0_i32, %c0_i32_0 : i32, i32
  }
  func.func @transform_6(%arg0: i32) -> (i32, i32) {
    %c0_i32 = arith.constant 0 : i32
    %c0_i32_0 = arith.constant 0 : i32
    %c0_i32_1 = arith.constant 0 : i32
    return %c0_i32, %c0_i32_0 : i32, i32
  }
  func.func @transform_7(%arg0: i32) -> (i32, i32) {
    %c0_i32 = arith.constant 0 : i32
    %c0_i32_0 = arith.constant 0 : i32
    return %arg0, %c0_i32 : i32, i32
  }
  func.func @transform_8(%arg0: i32) -> (i32, i32) {
    %c0_i32 = arith.constant 0 : i32
    %c0_i32_0 = arith.constant 0 : i32
    return %arg0, %c0_i32 : i32, i32
  }
}

</mosaic_0001>

<bundles_post_ra>
// kernel: classifier_forward.1
= control target key start
LH: loop header
LB: loop body
LE: loop exit
PB: predicated region body
PF: predicated region fallthrough
CT: control target
= control target key end

     0   :  { %s1396_s27 = smov 0   ;;  %s1511_s0 = inlined_call_operand.vmem [shape: bf16[16,16,16], index: 0, kind: input, shape index: {}]   ;;  %s1512_s1 = inlined_call_operand.vmem [shape: bf16[16,16,8], index: 1, kind: input, shape index: {}]   ;;  %s1513_s2 = inlined_call_operand.vmem [shape: bf16[8,128], index: 2, kind: input, shape index: {}]   ;;  %s1514_s3 = inlined_call_operand.vmem [shape: bf16[128,128], index: 3, kind: input, shape index: {}]   ;;  %s1515_s4 = inlined_call_operand.vmem [shape: f32[1,128], index: 4, kind: input, shape index: {}]   ;;  %s1516_s5 = inlined_call_operand.vmem [shape: bf16[128,128], index: 5, kind: input, shape index: {}]   ;;  %s1517_s6 = inlined_call_operand.vmem [shape: f32[1,128], index: 6, kind: input, shape index: {}]   ;;  %s1518_s7 = inlined_call_operand.vmem [shape: s32[16,1], index: 7, kind: input, shape index: {}]   ;;  %s1519_s8 = inlined_call_operand.vmem [shape: f32[16,128], index: 8, kind: output, shape index: {}]  }
   0x1 LB: > { %s1402_s28 = sadd.s32 4294967295, %s1346_s27   ;;  %p1095_p0 = scmp.ge.s32.totalorder %s1346_s27, 1  ;;  %s1346_s27 = sphi %s1396_s27, %s18_s27  }
   0x2   : > { %p285_p1 = scmp.lt.s32.totalorder %s1346_s27, 3 }
   0x4   : > { %p286_p2 = pnand %p1095_p0, %p285_p1 }
   0x5   : > { %s1096_s29 = sshll.u32 (!%p286_p2), %s1402_s28, 3  ;;  %p343_p4 = scmp.lt.s32.totalorder (!%p286_p2), %s1402_s28, 1 }
   0x6   : > { %289 = sbr.rel (%p286_p2) target bundleno = 1016 (0x3f8), region = 52  ;;  %p330_p3 = scmp.lt.s32.totalorder (!%p286_p2), %s1096_s29, 15 }
   0xb   : > { %s1521_s29 = smov (!%p330_p3, %s1096_s29), 15  ;;  %vm395_vm0 = vcmask 130048   ;;  %v617_v16 = vld [vmem:[%s1513_s2] sm:$0xf]  ;;  %vm643_vm1 = vcmask 1043456   ;;  %vm618_vm2 = vcmask 64512  }
   0xc   : > { %s1251_s30 = sshll.u32 %s1521_s29, 3  ;;  %v645_v17 = vsel %vm643_vm1, %v617_v16, 0  ;;  %v1276_v50 = vld [vmem:[%s1514_s3 + $0x38] sm:$0xff]  ;;  %v1275_v53 = vld [vmem:[%s1514_s3 + $0x30] sm:$0xff]  ;;  %v1348_v58 = vmov 16.0   ;;  %v1274_v59 = vld [vmem:[%s1514_s3 + $0x28] sm:$0xff] }
   0xd   : > { %s334_s11 = scalar_lea.vmem %s1511_s0, %s1251_s30  ;;  %s341_s14 = scalar_lea.vmem %s1512_s1, %s1251_s30  ;;  %vm827_vm4 = vcmask 1041409   ;;  %vm829_vm5 = vcmask 1042434   ;;  %vm831_vm6 = vcmask 1043459   ;;  %vm833_vm7 = vcmask 1044484  }
   0xe   : > { %v1261_v0 = vld [vmem:[%s341_s14] sm:$0xff]  ;;  %v1262_v1 = vld [vmem:[%s341_s14 + $0x8] sm:$0xff]  ;;  %v1263_v2 = vld [vmem:[%s341_s14 + $0x10] sm:$0xff]  ;;  %vm835_vm8 = vcmask 1045509   ;;  %vm837_vm9 = vcmask 1046534   ;;  %vm839_vm10 = vcmask 1047559  }
   0xf   : > { %v1253_v3 = vld [vmem:[%s334_s11] sm:$0xff]  ;;  %v1254_v4 = vld [vmem:[%s334_s11 + $0x8] sm:$0xff]  ;;  %406 = vmatpush.bf16.msra.mxu0 %v1261_v0  ;;  %434 = vmatpush.bf16.msra.mxu1 %v1262_v1  ;;  %v1264_v6 = vld [vmem:[%s341_s14 + $0x18] sm:$0xff]  ;;  %s1523_s28 = smov (!%p343_p4, %s1402_s28), 1 }
  0x10   : > { %v1266_v5 = vld [vmem:[%s341_s14 + $0x28] sm:$0xff]  ;;  %v1255_v7 = vld [vmem:[%s334_s11 + $0x10] sm:$0xff]  ;;  %462 = vmatpush.bf16.msra.mxu2 %v1263_v2  ;;  %v1256_v8 = vld [vmem:[%s334_s11 + $0x18] sm:$0xff]  ;;  %490 = vmatpush.bf16.msra.mxu3 %v1264_v6  ;;  %s1102_s13 = sshll.u32 %s1523_s28, 3 }
  0x11   : > { %v1267_v9 = vld [vmem:[%s341_s14 + $0x30] sm:$0xff]  ;;  %v1265_v10 = vld [vmem:[%s341_s14 + $0x20] sm:$0xff]  ;;  %v1268_v11 = vld [vmem:[%s341_s14 + $0x38] sm:$0xff]  ;;  %s346_s16 = scalar_lea.vmem %s1518_s7, %s1102_s13  ;;  %s350_s19 = scalar_lea.vmem %s1519_s8, %s1102_s13 }
  0x12   : > { %1112 = vmatmul.msk.bf16.vlgmr.msra.gmra.mxu0 %vm395_vm0, %v1253_v3  ;;  %1121 = vmatmul.msk.bf16.vlgmr.msra.gmra.mxu1 %vm395_vm0, %v1254_v4  ;;  %v1258_v12 = vld [vmem:[%s334_s11 + $0x28] sm:$0xff]  ;;  %v1257_v13 = vld [vmem:[%s334_s11 + $0x20] sm:$0xff]  ;;  %v1259_v14 = vld [vmem:[%s334_s11 + $0x30] sm:$0xff] }
  0x13   : > { %546 = vmatpush.bf16.msrb.mxu1 %v1266_v5  ;;  %1130 = vmatmul.msk.bf16.vlgmr.msra.gmra.mxu2 %vm395_vm0, %v1255_v7  ;;  %v1260_v15 = vld [vmem:[%s334_s11 + $0x38] sm:$0xff]  ;;  %v1273_v2 = vld [vmem:[%s1514_s3 + $0x20] sm:$0xff] }
  0x14   : > { %518 = vmatpush.bf16.msrb.mxu0 %v1265_v10  ;;  %1139 = vmatmul.msk.bf16.vlgmr.msra.gmra.mxu3 %vm395_vm0, %v1256_v8  ;;  %v1272_v10 = vld [vmem:[%s1514_s3 + $0x18] sm:$0xff] }
  0x15   : > { %574 = vmatpush.bf16.msrb.mxu2 %v1267_v9  ;;  %602 = vmatpush.bf16.msrb.mxu3 %v1268_v11 }
  0x17   : > { %1285 = vmatpush.bf16.msra.mxu1 %v645_v17 }
  0x18   : > { %654 = vmatpush.bf16.msra.mxu0 %v645_v17 }
  0x19   : > { %1286 = vmatpush.bf16.msra.mxu3 %v645_v17 }
  0x22   : > { %1157 = vmatmul.msk.bf16.vlgmr.msrb.gmra.mxu1 %vm395_vm0, %v1258_v12  ;;  %1148 = vmatmul.msk.bf16.vlgmr.msrb.gmra.mxu0 %vm395_vm0, %v1257_v13 }
  0x23   : > { %1166 = vmatmul.msk.bf16.vlgmr.msrb.gmra.mxu2 %vm395_vm0, %v1259_v14  ;;  %891 = vmatpush.bf16.msrb.mxu1 %v1276_v50 }
  0x24   : > { %1175 = vmatmul.msk.bf16.vlgmr.msrb.gmra.mxu3 %vm395_vm0, %v1260_v15 }
  0x27   : > { %892 = vmatpush.bf16.msrb.mxu1 %v1275_v53 }
  0x2b   : > { %893 = vmatpush.bf16.msrb.mxu1 %v1274_v59 }
  0x2f   : > { %894 = vmatpush.bf16.msrb.mxu1 %v1273_v2 }
  0x33   : > { %895 = vmatpush.bf16.msrb.mxu1 %v1272_v10 }
  0x8f   : > { %v408_v18 = vpop.f32.mrf.mxu0  ;;  %v436_v19 = vpop.f32.mrf.mxu1 }
  0x96   : > { %v464_v20 = vpop.f32.mrf.mxu2 }
  0x97   : > { %v410_v21 = vpop.f32.mrf.mxu0  ;;  %v438_v22 = vpop.f32.mrf.mxu1 }
  0x98   : > { %v609_v23 = vpack.c.bf16 %v410_v21, %v408_v18  ;;  %v492_v24 = vpop.f32.mrf.mxu3  ;;  %v610_v31 = vpack.c.bf16 %v438_v22, %v436_v19 }
  0x9a   : > { %1176 = vmatmul.msk.bf16.vlgmr.msra.gmra.mxu0 %vm618_vm2, %v609_v23 }
  0x9e   : > { %v466_v27 = vpop.f32.mrf.mxu2 }
  0x9f   : > { %v548_v25 = vpop.f32.mrf.mxu1  ;;  %v520_v29 = vpop.f32.mrf.mxu0  ;;  %v611_v37 = vpack.c.bf16 %v466_v27, %v464_v20  ;;  %v1271_v20 = vld [vmem:[%s1514_s3 + $0x10] sm:$0xff] }
  0xa0   : > { %v494_v26 = vpop.f32.mrf.mxu3  ;;  %896 = vmatpush.bf16.msrb.mxu1 %v1271_v20 }
  0xa1   : > { %v612_v28 = vpack.c.bf16 %v494_v26, %v492_v24  ;;  %v1270_v26 = vld [vmem:[%s1514_s3 + $0x8] sm:$0xff] }
  0xa3   : > { %1179 = vmatmul.msk.bf16.vlgmr.msra.gmra.mxu1 %vm618_vm2, %v612_v28 }
  0xa4   : > { %897 = vmatpush.bf16.msrb.mxu1 %v1270_v26 }
  0xa6   : > { %v576_v33 = vpop.f32.mrf.mxu2 }
  0xa7   : > { %v550_v30 = vpop.f32.mrf.mxu1  ;;  %v522_v34 = vpop.f32.mrf.mxu0 }
  0xa8   : > { %v614_v32 = vpack.c.bf16 %v550_v30, %v548_v25  ;;  %v613_v35 = vpack.c.bf16 %v522_v34, %v520_v29  ;;  %v604_v39 = vpop.f32.mrf.mxu3 }
  0xaa   : > { %1177 = vmatmul.msk.bf16.gmra.mxu0 %vm618_vm2, %v610_v31  ;;  %1181 = vmatmul.msk.bf16.vlgmr.msra.gmra.mxu3 %vm618_vm2, %v614_v32 }
  0xae   : > { %v578_v36 = vpop.f32.mrf.mxu2 }
  0xaf   : > { %v615_v38 = vpack.c.bf16 %v578_v36, %v576_v33 }
  0xb0   : > { %v606_v40 = vpop.f32.mrf.mxu3 }
  0xb1   : > { %v616_v41 = vpack.c.bf16 %v606_v40, %v604_v39  ;;  %v1269_v39 = vld [vmem:[%s1514_s3] sm:$0xff] }
  0xb2   : > { %898 = vmatpush.bf16.msrb.mxu1 %v1269_v39 }
  0xb3   : > { %1180 = vmatmul.msk.bf16.gmra.mxu1 %vm618_vm2, %v613_v35 }
  0xba   : > { %1178 = vmatmul.msk.bf16.gmra.mxu0 %vm618_vm2, %v611_v37  ;;  %1182 = vmatmul.msk.bf16.gmra.mxu3 %vm618_vm2, %v615_v38 }
  0xca   : > { %1183 = vmatmul.msk.bf16.gmra.mxu3 %vm618_vm2, %v616_v41 }
 0x117   : > { %v656_v42 = vpop.f32.mrf.mxu0 }
 0x118   : > { %1302 = vtanh.f32 %v656_v42 }
 0x11e   : > { %v1303_v54 = vpop.eup %1302 }
 0x11f   : > { %v658_v43 = vpop.f32.mrf.mxu0 }
 0x120   : > { %v671_v44 = vpop.f32.mrf.mxu1 }
 0x127   : > { %v661_v45 = vpop.f32.mrf.mxu0 }
 0x128   : > { %v673_v46 = vpop.f32.mrf.mxu1 }
 0x12d   : > { %v681_v47 = vpop.f32.mrf.mxu3 }
 0x12f   : > { %v663_v48 = vpop.f32.mrf.mxu0 }
 0x130   : > { %v676_v49 = vpop.f32.mrf.mxu1  ;;  %1304 = vtanh.f32 %v663_v48 }
 0x131   : > { %1306 = vtanh.f32 %v658_v43 }
 0x132   : > { %1308 = vtanh.f32 %v661_v45 }
 0x133   : > { %1310 = vtanh.f32 %v671_v44 }
 0x134   : > { %1312 = vtanh.f32 %v673_v46 }
 0x135   : > { %v683_v51 = vpop.f32.mrf.mxu3  ;;  %1314 = vrcp.f32 %v1348_v58 }
 0x136   : > { %v1305_v55 = vpop.eup %1304  ;;  %1316 = vtanh.f32 %v676_v49 }
 0x137   : > { %v666_v52 = vpop.f32.mrf.mxu0  ;;  %v1307_v57 = vpop.eup %1306 }
 0x138   : > { %v678_v56 = vpop.f32.mrf.mxu1  ;;  %v1309_v60 = vpop.eup %1308  ;;  %v712_v0 = vadd.f32 %v1307_v57, %v1303_v54 }
 0x139   : > { %v719_v61 = vadd.f32 %v1309_v60, %v1305_v55  ;;  %1318 = vtanh.f32 %v678_v56  ;;  %v1311_v63 = vpop.eup %1310  ;;  %v1284_v55 = vld [vmem:[%s1516_s5 + $0x38] sm:$0xff] }
 0x13a   : > { %1320 = vtanh.f32 %v683_v51  ;;  %v1313_v3 = vpop.eup %1312  ;;  %v713_v8 = vrot.slane %v712_v0, 4  ;;  %974 = vmatpush.bf16.msra.mxu2 %v1284_v55  ;;  %v1278_v55 = vld [vmem:[%s1516_s5 + $0x8] sm:$0xff] }
 0x13b   : > { %1322 = vtanh.f32 %v666_v52  ;;  %v1444_v4 = vpop.eup %1314  ;;  %v720_v5 = vrot.slane %v719_v61, 4  ;;  %v733_v9 = vadd.f32 %v1313_v3, %v1311_v63 }
 0x13c   : > { %v1317_v6 = vpop.eup %1316  ;;  %v714_v17 = vadd.f32 %v713_v8, %v712_v0  ;;  %v769_v22 = vmul.f32 16.0, %v1444_v4  ;;  %vm773_vm3 = vweird.f32 %v1444_v4 }
 0x13d   : > { %v686_v62 = vpop.f32.mrf.mxu3  ;;  %v721_v13 = vadd.f32 %v720_v5, %v719_v61  ;;  %v734_v18 = vrot.slane %v733_v9, 4  ;;  %v1283_v61 = vld [vmem:[%s1516_s5 + $0x30] sm:$0xff] }
 0x13e   : > { %v715_v29 = vrot.slane %v714_v17, 2  ;;  %v770_v33 = vsub.f32 1.0, %v769_v22  ;;  %975 = vmatpush.bf16.msra.mxu2 %v1283_v61 }
 0x13f   : > { %v668_v1 = vpop.f32.mrf.mxu0  ;;  %v1319_v7 = vpop.eup %1318  ;;  %v722_v23 = vrot.slane %v721_v13, 2  ;;  %v735_v30 = vadd.f32 %v734_v18, %v733_v9 }
 0x140   : > { %1324 = vtanh.f32 %v668_v1  ;;  %v1321_v11 = vpop.eup %1320  ;;  %v740_v16 = vadd.f32 %v1319_v7, %v1317_v6  ;;  %v716_v41 = vadd.f32 %v715_v29, %v714_v17  ;;  %v771_v45 = vmul.f32 %v1444_v4, %v770_v33  ;;  %v1282_v7 = vld [vmem:[%s1516_s5 + $0x28] sm:$0xff]  ;;  %v1281_v17 = vld [vmem:[%s1516_s5 + $0x20] sm:$0xff] }
 0x141   : > { %1326 = vtanh.f32 %v681_v47  ;;  %v1323_v12 = vpop.eup %1322  ;;  %v723_v34 = vadd.f32 %v722_v23, %v721_v13  ;;  %v736_v42 = vrot.slane %v735_v30, 2 }
 0x142   : > { %1328 = vtanh.f32 %v686_v62  ;;  %v741_v27 = vrot.slane %v740_v16, 4  ;;  %v717_v51 = vrot.slane %v716_v41, 1  ;;  %v772_v53 = vadd.f32 %v1444_v4, %v771_v45  ;;  %976 = vmatpush.bf16.msra.mxu2 %v1282_v7 }
 0x143   : > { %v724_v46 = vrot.slane %v723_v34, 1  ;;  %v737_v52 = vadd.f32 %v736_v42, %v735_v30 }
 0x144   : > { %v742_v40 = vadd.f32 %v741_v27, %v740_v16  ;;  %v718_v62 = vadd.f32 %v717_v51, %v716_v41  ;;  %v774_v0 = vsel %vm773_vm3, %v1444_v4, %v772_v53  ;;  %v1280_v27 = vld [vmem:[%s1516_s5 + $0x18] sm:$0xff] }
 0x145   : > { %v688_v14 = vpop.f32.mrf.mxu3  ;;  %v725_v56 = vadd.f32 %v724_v46, %v723_v34  ;;  %v738_v63 = vrot.slane %v737_v52, 1 }
 0x146   : > { %v1325_v15 = vpop.eup %1324  ;;  %1330 = vtanh.f32 %v688_v14  ;;  %v743_v49 = vrot.slane %v742_v40, 2  ;;  %v775_v9 = vmul.f32 %v774_v0, %v718_v62  ;;  %977 = vmatpush.bf16.msra.mxu2 %v1281_v17 }
 0x147   : > { %v726_v19 = vadd.f32 %v1325_v15, %v1323_v12  ;;  %v1327_v21 = vpop.eup %1326  ;;  %v776_v2 = vmul.f32 %v774_v0, %v725_v56  ;;  %v739_v10 = vadd.f32 %v738_v63, %v737_v52  ;;  %v1277_v56 = vld [vmem:[%s1516_s5] sm:$0xff] }
 0x148   : > { %v747_v24 = vadd.f32 %v1327_v21, %v1321_v11  ;;  %v1329_v28 = vpop.eup %1328  ;;  %v744_v59 = vadd.f32 %v743_v49, %v742_v40  ;;  %v783_v18 = vpack.c.bf16 %v775_v9, %v775_v9  ;;  %v1301_v63 = vld [vmem:[%s1517_s6] ss:$0 sm:$0xff] }
 0x149   : > { %v727_v25 = vrot.slane %v726_v19, 4  ;;  %v784_v13 = vpack.c.bf16 %v776_v2, %v776_v2 }
 0x14a   : > { %v748_v35 = vrot.slane %v747_v24, 4  ;;  %v745_v5 = vrot.slane %v744_v59, 1  ;;  %978 = vmatpush.bf16.msra.mxu2 %v1280_v27 }
 0x14b   : > { %v728_v31 = vadd.f32 %v727_v25, %v726_v19  ;;  %v778_v19 = vmul.f32 %v774_v0, %v739_v10  ;;  %v820_v22 = vunpack.c.l.b16 %v784_v13 }
 0x14c   : > { %v1331_v32 = vpop.eup %1330  ;;  %v749_v47 = vadd.f32 %v748_v35, %v747_v24  ;;  %v746_v16 = vadd.f32 %v745_v5, %v744_v59  ;;  %v1349_v5 = vmov 0  }
 0x14d   : > { %v729_v36 = vrot.slane %v728_v31, 2  ;;  %v754_v37 = vadd.f32 %v1331_v32, %v1329_v28  ;;  %v691_v38 = vpop.f32.mrf.mxu3  ;;  %v819_v28 = vunpack.c.l.b16 %v783_v18  ;;  %v786_v29 = vpack.c.bf16 %v778_v19, %v778_v19  ;;  %1298 = vset.pattern.permute.xlu1 %v1349_v5  ;;  %1299 = vset.pattern.permute.xlu0 %v1349_v5 }
 0x14e   : > { %v750_v57 = vrot.slane %v749_v47, 2  ;;  %1332 = vtanh.f32 %v691_v38  ;;  %v779_v25 = vmul.f32 %v774_v0, %v746_v16 }
 0x14f   : > { %v730_v43 = vadd.f32 %v729_v36, %v728_v31  ;;  %v755_v44 = vrot.slane %v754_v37, 4  ;;  %v828_v32 = vsel %vm827_vm4, %v820_v22, %v819_v28  ;;  %v822_v38 = vunpack.c.l.b16 %v786_v29 }
 0x150   : > { %v751_v3 = vadd.f32 %v750_v57, %v749_v47  ;;  %v787_v35 = vpack.c.bf16 %v779_v25, %v779_v25  ;;  %v1300_v57 = vld [vmem:[%s1515_s4] ss:$0 sm:$0xff] }
 0x151   : > { %v756_v48 = vadd.f32 %v755_v44, %v754_v37  ;;  %v731_v50 = vrot.slane %v730_v43, 1  ;;  %v1279_v37 = vld [vmem:[%s1516_s5 + $0x10] sm:$0xff] }
 0x152   : > { %v752_v14 = vrot.slane %v751_v3, 1  ;;  %v823_v44 = vunpack.c.l.b16 %v787_v35  ;;  %979 = vmatpush.bf16.msra.mxu2 %v1279_v37 }
 0x153   : > { %v757_v54 = vrot.slane %v756_v48, 2  ;;  %v732_v60 = vadd.f32 %v731_v50, %v730_v43 }
 0x154   : > { %v1333_v8 = vpop.eup %1332  ;;  %v753_v23 = vadd.f32 %v752_v14, %v751_v3  ;;  %v1000_v3 = vld [vmem:[%s346_s16] sm:$0xff] }
 0x155   : > { %v693_v58 = vpop.f32.mrf.mxu3  ;;  %v758_v1 = vadd.f32 %v757_v54, %v756_v48  ;;  %v777_v6 = vmul.f32 %v774_v0, %v732_v60  ;;  %1002 = vperm.xlu1 %1298, %v1000_v3  }
 0x156   : > { %1334 = vtanh.f32 %v693_v58  ;;  %v780_v33 = vmul.f32 %v774_v0, %v753_v23  ;;  %980 = vmatpush.bf16.msra.mxu2 %v1278_v55 }
 0x157   : > { %v759_v12 = vrot.slane %v758_v1, 1  ;;  %v785_v4 = vpack.c.bf16 %v777_v6, %v777_v6 }
 0x158   : > { %v788_v41 = vpack.c.bf16 %v780_v33, %v780_v33 }
 0x159   : > { %v760_v21 = vadd.f32 %v759_v12, %v758_v1  ;;  %v821_v26 = vunpack.c.l.b16 %v785_v4  ;;  %v1350_v4 = vmov 0.0  }
 0x15a   : > { %v824_v48 = vunpack.c.l.b16 %v788_v41  ;;  %981 = vmatpush.bf16.msra.mxu2 %v1277_v56 }
 0x15b   : > { %v781_v31 = vmul.f32 %v774_v0, %v760_v21  ;;  %v830_v36 = vsel %vm829_vm5, %v821_v26, %v828_v32 }
 0x15c   : > { %v1335_v11 = vpop.eup %1334  ;;  %v832_v43 = vsel %vm831_vm6, %v822_v38, %v830_v36 }
 0x15d   : > { %v761_v15 = vadd.f32 %v1335_v11, %v1333_v8  ;;  %v789_v40 = vpack.c.bf16 %v781_v31, %v781_v31  ;;  %v834_v47 = vsel %vm833_vm7, %v823_v44, %v832_v43  ;;  %v998_v11 = vlaneseq }
 0x15e   : > { %v836_v51 = vsel %vm835_vm8, %v824_v48, %v834_v47 }
 0x15f   : > { %v762_v20 = vrot.slane %v761_v15, 4  ;;  %v825_v46 = vunpack.c.l.b16 %v789_v40  ;;  %v999_v12 = vand.u32 127, %v998_v11 }
 0x161   : > { %v763_v24 = vadd.f32 %v762_v20, %v761_v15  ;;  %v838_v52 = vsel %vm837_vm9, %v825_v46, %v836_v51  ;;  %vm1011_vm12 = vcmp.eq.s32.totalorder %v999_v12, 127 }
 0x163   : > { %v764_v30 = vrot.slane %v763_v24, 2 }
 0x165   : > { %v765_v34 = vadd.f32 %v764_v30, %v763_v24 }
 0x167   : > { %v766_v39 = vrot.slane %v765_v34, 1 }
 0x169   : > { %v767_v42 = vadd.f32 %v766_v39, %v765_v34 }
 0x16b   : > { %v782_v45 = vmul.f32 %v774_v0, %v767_v42 }
 0x16d   : > { %v790_v49 = vpack.c.bf16 %v782_v45, %v782_v45 }
 0x16f   : > { %v826_v50 = vunpack.c.l.b16 %v790_v49 }
 0x171   : > { %v840_v53 = vsel %vm839_vm10, %v826_v50, %v838_v52 }
 0x172   : > { %v841_v54 = vpack.c.b16 %v840_v53, %v840_v53 }
 0x174   : > { %899 = vmatmul.bf16.vlgmr.msrb.gmra.mxu1 %v841_v54 }
 0x1c7   : > { %v1003_v13 = vpop.permute.xlu1 %1002 }
 0x1c8   : > { %vm1004_vm11 = vcmp.eq.s32.totalorder %v999_v12, %v1003_v13 }
 0x1c9   : > { %v1248_v17 = vsel %vm1004_vm11, 1.0, %v1350_v4 }
 0x1f1   : > { %v900_v58 = vpop.f32.mrf.mxu1 }
 0x1f2   : > { %v901_v59 = vadd.f32 %v1300_v57, %v900_v58 }
 0x1f4   : > { %v904_v60 = vmax.f32 %v901_v59, 0.0 }
 0x1f6   : > { %v905_v61 = vpack.c.bf16 %v904_v60, %v904_v60 }
 0x1f8   : > { %982 = vmatmul.bf16.vlgmr.msra.gmra.mxu2 %v905_v61 }
 0x1f9   : > { %v902_v62 = vpop.f32.mrf.mxu1 }
 0x27b   : > { %v983_v0 = vpop.f32.mrf.mxu2 }
 0x27c   : > { %v984_v1 = vadd.f32 %v1301_v63, %v983_v0 }
 0x27e   : > { %987 = vmax.xlane.f32.xlu0 %v984_v1 }
 0x283   : > { %v985_v2 = vpop.f32.mrf.mxu2 }
 0x2f1   : > { %v988_v6 = vpop.xlane.xlu0 %987 }
 0x2f2   : > { %v989_v7 = vsub.f32 %v984_v1, %v988_v6 }
 0x2f4   : > { %v990_v8 = vmul.f32 1.442695, %v989_v7 }
 0x2f6   : > { %1336 = vpow2.f32 %v990_v8 }
 0x2fc   : > { %v1337_v9 = vpop.eup %1336 }
 0x2fd   : > { %992 = vadd.xlane.f32.xlu0 %v1337_v9 }
 0x370   : > { %v993_v10 = vpop.xlane.xlu0 %992 }
 0x371   : > { %1338 = vlog2.f32 %v993_v10 }
 0x377   : > { %v1339_v14 = vpop.eup %1338 }
 0x378   : > { %v995_v15 = vmul.f32 0.6931472, %v1339_v14 }
 0x37a   : > { %v996_v16 = vadd.f32 %v995_v15, %v988_v6 }
 0x37c   : > { %v997_v18 = vsub.f32 %v984_v1, %v996_v16 }
 0x37e   : > { %v1007_v19 = vmul.f32 %v1248_v17, %v997_v18 }
 0x380   : > { %1008 = vadd.xlane.f32.xlu1 %v1007_v19 }
 0x3f3   : > { %v1009_v20 = vpop.xlane.xlu1 %1008 }
 0x3f4   : > { %v1010_v21 = vsub.f32 0.0, %v1009_v20 }
 0x3f6   : > { %v1012_v22 = vsel %vm1011_vm12, %v1010_v21, %v997_v18 }
 0x3f7   : > { %1013 = vst [vmem:[%s350_s19] sm:$0xff] %v1012_v22 }
 0x3f8 PF: > { %s18_s27 = sadd.s32 1, %s1346_s27  }
 0x3f9   : > { %p15_p5 = scmp.ge.s32.totalorder %s18_s27, 4  }
 0x3fb   :  { %17 = sbr.rel (!%p15_p5) target bundleno = 1 (0x1), region = 88 }

</bundles_post_ra>
